<compile_context>
chip_gen: v7x
topology: tpu7x:2x2x1
jax: 0.10.0
libtpu: 0.0.40
codegen_flags: <defaults>
</compile_context>

<pallas_src>
import functools

import jax
import jax.numpy as jnp
from jax.experimental import pallas as pl
from jax.experimental.pallas import tpu as pltpu


def _round_up(x: int, m: int) -> int:
    return (x + m - 1) // m * m


@functools.lru_cache(maxsize=1)
def _tpu_config():
    """Returns (vmem_limit_bytes, mxu_row_align) for the local TPU generation."""
    vmem_cap = 64 * 1024 * 1024            # conservative default (v7x physical VMEM)
    try:
        vmem_cap = int(pltpu.get_tpu_info().vmem_capacity_bytes)
    except Exception:
        pass
    vmem_limit = int(vmem_cap * 0.75)      # headroom for compiler scratch / spills
    row_align = 256                        # v6e/v7x MXU: 2x256x256
    try:
        kind = jax.devices()[0].device_kind.lower()
        if "v5" in kind:
            row_align = 128                # v5e MXU: 4x128x128
    except Exception:
        pass
    return vmem_limit, row_align


# ----------------------------------------------------------------------------
# Fused kernel: one batch tile [TM, Hp] through all three layers,
# weights VMEM-resident (single-buffered).
# ----------------------------------------------------------------------------
def _mlp3_kernel(x_ref, w1_ref, b1_ref, w2_ref, b2_ref, w3_ref, b3_ref, o_ref):
    x = x_ref[...].astype(jnp.bfloat16)                              # f32 -> bf16 in-kernel
    h1 = jnp.dot(x, w1_ref[...], preferred_element_type=jnp.float32) + b1_ref[...]
    h2 = jnp.dot(h1.astype(jnp.bfloat16), w2_ref[...],
                 preferred_element_type=jnp.float32) + b2_ref[...]
    y = jnp.dot(h2.astype(jnp.bfloat16), w3_ref[...],
                preferred_element_type=jnp.float32) + b3_ref[...]
    o_ref[...] = y.astype(o_ref.dtype)                               # f32 [TM, Op]


# ----------------------------------------------------------------------------
# Fallback kernel: one tiled Linear (y = x @ w + b) with a K reduction axis.
# Used when the three weights do not fit VMEM-resident (large Hp, esp. v7x).
# ----------------------------------------------------------------------------
def _linear_kernel(x_ref, w_ref, b_ref, o_ref, acc_ref):
    @pl.when(pl.program_id(2) == 0)
    def _():
        acc_ref[...] = jnp.zeros_like(acc_ref)

    acc_ref[...] += jnp.dot(x_ref[...].astype(jnp.bfloat16), w_ref[...],
                            preferred_element_type=jnp.float32)

    @pl.when(pl.program_id(2) == pl.num_programs(2) - 1)
    def _():
        o_ref[...] = (acc_ref[...] + b_ref[...]).astype(o_ref.dtype)


def _pick_tile(dim: int, pref: int = 512) -> int:
    for t in (pref, 256, 128):
        if dim % t == 0:
            return min(t, dim)
    return dim


def _tiled_linear(x, w, b, *, tm, vmem_limit):
    M, K = x.shape
    _, N = w.shape
    tk = _pick_tile(K)
    tn = _pick_tile(N)
    grid = (M // tm, N // tn, K // tk)
    return pl.pallas_call(
        _linear_kernel,
        out_shape=jax.ShapeDtypeStruct((M, N), jnp.float32),
        grid=grid,
        in_specs=[
            pl.BlockSpec((tm, tk), lambda i, j, k: (i, k)),
            pl.BlockSpec((tk, tn), lambda i, j, k: (k, j)),
            pl.BlockSpec((1, tn), lambda i, j, k: (0, j)),
        ],
        out_specs=pl.BlockSpec((tm, tn), lambda i, j, k: (i, j)),
        scratch_shapes=[pltpu.VMEM((tm, tn), jnp.float32)],
        compiler_params=pltpu.CompilerParams(
            dimension_semantics=("parallel", "parallel", "arbitrary"),
            vmem_limit_bytes=vmem_limit,
        ),
    )(x, w, b)


# ----------------------------------------------------------------------------
# One-time parameter conversion (hoisted out of the forward path).
#   PyTorch convention:  weight [out, in], bias [out]
#   Kernel layout:       weight [in_p, out_p] bf16 (zero padded),
#                        bias   [1, out_p]   f32  (zero padded)
# ----------------------------------------------------------------------------
def prepare_params(params, weight_dtype=jnp.bfloat16):
    H = params["w1"].shape[1]
    O = params["w3"].shape[0]
    Hp = _round_up(max(H, 1), 128)
    Op = _round_up(max(O, 1), 128)

    def pad2(a, rows, cols):
        return jnp.zeros((rows, cols), a.dtype).at[: a.shape[0], : a.shape[1]].set(a)

    def pad1(a, cols):
        return jnp.zeros((1, cols), a.dtype).at[0, : a.shape[0]].set(a)

    return {
        "w1": pad2(params["w1"].T, Hp, Hp).astype(weight_dtype),
        "w2": pad2(params["w2"].T, Hp, Hp).astype(weight_dtype),
        "w3": pad2(params["w3"].T, Hp, Op).astype(weight_dtype),
        "b1": pad1(params["b1"], Hp).astype(jnp.float32),
        "b2": pad1(params["b2"], Hp).astype(jnp.float32),
        "b3": pad1(params["b3"], Op).astype(jnp.float32),
    }


# ----------------------------------------------------------------------------
# Forward: net3(net2(net1(x)))
# ----------------------------------------------------------------------------
@functools.partial(jax.jit, static_argnames=("hidden_size", "output_dim", "tm"))
def toy_model_forward(x, prep, *, hidden_size, output_dim, tm=512):
    B, H = x.shape
    assert H == hidden_size
    Hp = prep["w1"].shape[0]
    Op = prep["w3"].shape[1]
    vmem_limit, row_align = _tpu_config()

    # ---- batch tiling -------------------------------------------------------
    Bp0 = _round_up(max(B, 1), 8)
    tm_eff = max(min(tm, Bp0), 8)
    # Prefer >=2 grid steps so the v7x megacore ("parallel" axis) can split them.
    if Bp0 >= 16:
        tm_eff = min(tm_eff, _round_up((Bp0 + 1) // 2, 8))
    # Align large tiles to the MXU row width (128 on v5e, 256 on v6e/v7x).
    if tm_eff >= row_align:
        tm_eff = (tm_eff // row_align) * row_align
    else:
        tm_eff = _round_up(tm_eff, 8)

    # ---- VMEM budgeting: fused/resident vs per-layer fallback ---------------
    def fused_vmem(tm_):
        wbytes = (2 * Hp * Hp + Hp * Op) * 2 + (2 * Hp + Op) * 4     # single-buffered
        act = 2 * tm_ * Hp * 4 + 2 * tm_ * Op * 4                    # x/out double buffers
        inter = tm_ * Hp * (4 + 2) * 2                               # h1/h2 f32 + bf16 copies
        return int((wbytes + act + inter) * 1.15)

    while tm_eff > 8 and fused_vmem(tm_eff) > vmem_limit:
        tm_eff = max(_round_up(tm_eff // 2, 8), 8)
    use_fused = fused_vmem(tm_eff) <= vmem_limit

    Bp = _round_up(Bp0, tm_eff)
    grid_m = Bp // tm_eff

    # ---- pad activations only when needed (x stays f32; cast is in-kernel) --
    if (Bp, Hp) == (B, H):
        x_p = x
    else:
        x_p = jnp.zeros((Bp, Hp), x.dtype).at[:B, :H].set(x)

    if use_fused:
        def resident(shape):
            idx = lambda i: (0,) * len(shape)
            try:
                return pl.BlockSpec(shape, idx, pipeline_mode=pl.Buffered(1))
            except TypeError:   # older API without pipeline_mode
                return pl.BlockSpec(shape, idx)

        flops = 2 * Bp * Hp * (Hp + Hp + Op)
        bytes_accessed = (
            Bp * Hp * 4                      # x (f32)
            + (2 * Hp * Hp + Hp * Op) * 2    # weights (bf16)
            + (2 * Hp + Op) * 4              # biases (f32)
            + Bp * Op * 4                    # output (f32)
        )

        out_p = pl.pallas_call(
            _mlp3_kernel,
            out_shape=jax.ShapeDtypeStruct((Bp, Op), jnp.float32),
            grid=(grid_m,),
            in_specs=[
                pl.BlockSpec((tm_eff, Hp), lambda i: (i, 0)),   # x : batch-tiled
                resident((Hp, Hp)),                             # w1: VMEM-resident, 1-buffered
                resident((1, Hp)),                              # b1
                resident((Hp, Hp)),                             # w2
                resident((1, Hp)),                              # b2
                resident((Hp, Op)),                             # w3
                resident((1, Op)),                              # b3
            ],
            out_specs=pl.BlockSpec((tm_eff, Op), lambda i: (i, 0)),
            compiler_params=pltpu.CompilerParams(
                dimension_semantics=("parallel",),
                vmem_limit_bytes=vmem_limit,
            ),
            cost_estimate=pl.CostEstimate(
                flops=flops, transcendentals=0, bytes_accessed=bytes_accessed
            ),
        )(x_p, prep["w1"], prep["b1"], prep["w2"], prep["b2"], prep["w3"], prep["b3"])
    else:
        # Weights too large to keep VMEM-resident (e.g. large Hp on v7x's 64 MiB):
        # three per-layer tiled matmuls with a K reduction axis + f32 accumulator.
        h = _tiled_linear(x_p, prep["w1"], prep["b1"], tm=tm_eff, vmem_limit=vmem_limit)
        h = _tiled_linear(h, prep["w2"], prep["b2"], tm=tm_eff, vmem_limit=vmem_limit)
        out_p = _tiled_linear(h, prep["w3"], prep["b3"], tm=tm_eff, vmem_limit=vmem_limit)

    if Bp == B and Op == output_dim:
        return out_p                         # no extra HBM pass for the slice
    return out_p[:B, :output_dim]


# ----------------------------------------------------------------------------
# Init / reference (PyTorch nn.Linear semantics, f32)
# ----------------------------------------------------------------------------
def init_params(key, hidden_size, output_dim, dtype=jnp.float32):
    def linear_init(k, out_f, in_f):
        kw, kb = jax.random.split(k)
        bound = 1.0 / jnp.sqrt(in_f)
        w = jax.random.uniform(kw, (out_f, in_f), dtype, -bound, bound)
        b = jax.random.uniform(kb, (out_f,), dtype, -bound, bound)
        return w, b

    k1, k2, k3 = jax.random.split(key, 3)
    w1, b1 = linear_init(k1, hidden_size, hidden_size)
    w2, b2 = linear_init(k2, hidden_size, hidden_size)
    w3, b3 = linear_init(k3, output_dim, hidden_size)
    return {"w1": w1, "b1": b1, "w2": w2, "b2": b2, "w3": w3, "b3": b3}


def reference_forward(x, p):
    h1 = x @ p["w1"].T + p["b1"]
    h2 = h1 @ p["w2"].T + p["b2"]
    return h2 @ p["w3"].T + p["b3"]


if __name__ == "__main__":
    batch = 2
    hidden_size = 32
    output_dim = 8

    key = jax.random.PRNGKey(0)
    kx, kp = jax.random.split(key)
    x = jax.random.normal(kx, (batch, hidden_size), jnp.float32)
    params = init_params(kp, hidden_size, output_dim)

    prep = prepare_params(params)                      # one-time conversion (hoisted)
    out = toy_model_forward(x, prep, hidden_size=hidden_size, output_dim=output_dim)
    out = jax.block_until_ready(out)

    ref = reference_forward(x, params)
    assert out.shape == (batch, output_dim)
    # bf16 MXU operands with f32 accumulation -> relaxed tolerance vs. f32 reference.
    assert jnp.allclose(out, ref, atol=5e-2, rtol=5e-2), "mismatch vs reference"

    print("KERNEL_OK")
</pallas_src>

<mosaic_0001>
module attributes {stable_mosaic.version = 11 : i64} {
  func.func @_mlp3_kernel(%arg0: i32, %arg1: memref<8x128xf32, #tpu.memory_space<vmem>>, %arg2: memref<128x128xbf16, #tpu.memory_space<vmem>>, %arg3: memref<1x128xf32, #tpu.memory_space<vmem>>, %arg4: memref<128x128xbf16, #tpu.memory_space<vmem>>, %arg5: memref<1x128xf32, #tpu.memory_space<vmem>>, %arg6: memref<128x128xbf16, #tpu.memory_space<vmem>>, %arg7: memref<1x128xf32, #tpu.memory_space<vmem>>, %arg8: memref<8x128xf32, #tpu.memory_space<vmem>>) attributes {dimension_semantics = [#tpu.dimension_semantics<parallel>], iteration_bounds = array<i64: 1>, scalar_prefetch = 0 : i64, scratch_operands = 0 : i64, tpu.core_type = #tpu.core_type<tc>, window_params = [{transform_indices = @transform_0, window_bounds = array<i64: 8, 128>}, {pipeline_mode = #tpu.pipeline_mode<synchronous>, transform_indices = @transform_1, window_bounds = array<i64: 128, 128>}, {pipeline_mode = #tpu.pipeline_mode<synchronous>, transform_indices = @transform_2, window_bounds = array<i64: 1, 128>}, {pipeline_mode = #tpu.pipeline_mode<synchronous>, transform_indices = @transform_3, window_bounds = array<i64: 128, 128>}, {pipeline_mode = #tpu.pipeline_mode<synchronous>, transform_indices = @transform_4, window_bounds = array<i64: 1, 128>}, {pipeline_mode = #tpu.pipeline_mode<synchronous>, transform_indices = @transform_5, window_bounds = array<i64: 128, 128>}, {pipeline_mode = #tpu.pipeline_mode<synchronous>, transform_indices = @transform_6, window_bounds = array<i64: 1, 128>}, {transform_indices = @transform_7, window_bounds = array<i64: 8, 128>}]} {
    %c0 = arith.constant 0 : index
    %c0_0 = arith.constant 0 : index
    %0 = vector.load %arg1[%c0, %c0_0] : memref<8x128xf32, #tpu.memory_space<vmem>>, vector<8x128xf32>
    %1 = arith.truncf %0 : vector<8x128xf32> to vector<8x128xbf16>
    %c0_1 = arith.constant 0 : index
    %c0_2 = arith.constant 0 : index
    %2 = vector.load %arg2[%c0_1, %c0_2] : memref<128x128xbf16, #tpu.memory_space<vmem>>, vector<128x128xbf16>
    %cst = arith.constant dense<0.000000e+00> : vector<8x128xf32>
    %3 = tpu.matmul %1, %2, %cst {dimension_numbers = #tpu.dot_dimension_numbers<[1], [0], [0], [1], [0, 0, 1, 1], [], []>} : vector<8x128xbf16>, vector<128x128xbf16>, vector<8x128xf32> -> vector<8x128xf32>
    %c0_3 = arith.constant 0 : index
    %c0_4 = arith.constant 0 : index
    %4 = vector.load %arg3[%c0_3, %c0_4] : memref<1x128xf32, #tpu.memory_space<vmem>>, vector<1x128xf32>
    %5 = vector.broadcast %4 : vector<1x128xf32> to vector<8x128xf32>
    %6 = arith.addf %3, %5 : vector<8x128xf32>
    %7 = arith.truncf %6 : vector<8x128xf32> to vector<8x128xbf16>
    %c0_5 = arith.constant 0 : index
    %c0_6 = arith.constant 0 : index
    %8 = vector.load %arg4[%c0_5, %c0_6] : memref<128x128xbf16, #tpu.memory_space<vmem>>, vector<128x128xbf16>
    %cst_7 = arith.constant dense<0.000000e+00> : vector<8x128xf32>
    %9 = tpu.matmul %7, %8, %cst_7 {dimension_numbers = #tpu.dot_dimension_numbers<[1], [0], [0], [1], [0, 0, 1, 1], [], []>} : vector<8x128xbf16>, vector<128x128xbf16>, vector<8x128xf32> -> vector<8x128xf32>
    %c0_8 = arith.constant 0 : index
    %c0_9 = arith.constant 0 : index
    %10 = vector.load %arg5[%c0_8, %c0_9] : memref<1x128xf32, #tpu.memory_space<vmem>>, vector<1x128xf32>
    %11 = vector.broadcast %10 : vector<1x128xf32> to vector<8x128xf32>
    %12 = arith.addf %9, %11 : vector<8x128xf32>
    %13 = arith.truncf %12 : vector<8x128xf32> to vector<8x128xbf16>
    %c0_10 = arith.constant 0 : index
    %c0_11 = arith.constant 0 : index
    %14 = vector.load %arg6[%c0_10, %c0_11] : memref<128x128xbf16, #tpu.memory_space<vmem>>, vector<128x128xbf16>
    %cst_12 = arith.constant dense<0.000000e+00> : vector<8x128xf32>
    %15 = tpu.matmul %13, %14, %cst_12 {dimension_numbers = #tpu.dot_dimension_numbers<[1], [0], [0], [1], [0, 0, 1, 1], [], []>} : vector<8x128xbf16>, vector<128x128xbf16>, vector<8x128xf32> -> vector<8x128xf32>
    %c0_13 = arith.constant 0 : index
    %c0_14 = arith.constant 0 : index
    %16 = vector.load %arg7[%c0_13, %c0_14] : memref<1x128xf32, #tpu.memory_space<vmem>>, vector<1x128xf32>
    %17 = vector.broadcast %16 : vector<1x128xf32> to vector<8x128xf32>
    %18 = arith.addf %15, %17 : vector<8x128xf32>
    %c0_15 = arith.constant 0 : index
    %c0_16 = arith.constant 0 : index
    %19 = vector.load %arg8[%c0_15, %c0_16] : memref<8x128xf32, #tpu.memory_space<vmem>>, vector<8x128xf32>
    tpu.vector_store %arg8[%c0_15, %c0_16], %18 {strides = array<i32>} : memref<8x128xf32, #tpu.memory_space<vmem>>, vector<8x128xf32>,
    return
  }
  func.func @transform_0(%arg0: i32) -> (i32, i32) {
    %c0_i32 = arith.constant 0 : i32
    %c0_i32_0 = arith.constant 0 : i32
    return %arg0, %c0_i32 : i32, i32
  }
  func.func @transform_1(%arg0: i32) -> (i32, i32) {
    %c0_i32 = arith.constant 0 : i32
    %c0_i32_0 = arith.constant 0 : i32
    %c0_i32_1 = arith.constant 0 : i32
    return %c0_i32, %c0_i32_0 : i32, i32
  }
  func.func @transform_2(%arg0: i32) -> (i32, i32) {
    %c0_i32 = arith.constant 0 : i32
    %c0_i32_0 = arith.constant 0 : i32
    %c0_i32_1 = arith.constant 0 : i32
    return %c0_i32, %c0_i32_0 : i32, i32
  }
  func.func @transform_3(%arg0: i32) -> (i32, i32) {
    %c0_i32 = arith.constant 0 : i32
    %c0_i32_0 = arith.constant 0 : i32
    %c0_i32_1 = arith.constant 0 : i32
    return %c0_i32, %c0_i32_0 : i32, i32
  }
  func.func @transform_4(%arg0: i32) -> (i32, i32) {
    %c0_i32 = arith.constant 0 : i32
    %c0_i32_0 = arith.constant 0 : i32
    %c0_i32_1 = arith.constant 0 : i32
    return %c0_i32, %c0_i32_0 : i32, i32
  }
  func.func @transform_5(%arg0: i32) -> (i32, i32) {
    %c0_i32 = arith.constant 0 : i32
    %c0_i32_0 = arith.constant 0 : i32
    %c0_i32_1 = arith.constant 0 : i32
    return %c0_i32, %c0_i32_0 : i32, i32
  }
  func.func @transform_6(%arg0: i32) -> (i32, i32) {
    %c0_i32 = arith.constant 0 : i32
    %c0_i32_0 = arith.constant 0 : i32
    %c0_i32_1 = arith.constant 0 : i32
    return %c0_i32, %c0_i32_0 : i32, i32
  }
  func.func @transform_7(%arg0: i32) -> (i32, i32) {
    %c0_i32 = arith.constant 0 : i32
    %c0_i32_0 = arith.constant 0 : i32
    return %arg0, %c0_i32 : i32, i32
  }
}

</mosaic_0001>

<bundles_post_ra>
// kernel: toy_model_forward.1
= control target key start
LH: loop header
LB: loop body
LE: loop exit
PB: predicated region body
PF: predicated region fallthrough
CT: control target
= control target key end

     0   :  { %12 = vsyncpa [#allocation3], 0  ;;  %s771_s0 = inlined_call_operand.vmem [shape: f32[8,128], index: 0, kind: input, shape index: {}]   ;;  %s772_s1 = inlined_call_operand.hbm [shape: bf16[128,128], index: 1, kind: input, shape index: {}]   ;;  %s773_s2 = inlined_call_operand.vmem [shape: f32[1,128], index: 2, kind: input, shape index: {}]   ;;  %s774_s3 = inlined_call_operand.hbm [shape: bf16[128,128], index: 3, kind: input, shape index: {}]   ;;  %s775_s4 = inlined_call_operand.vmem [shape: f32[1,128], index: 4, kind: input, shape index: {}]   ;;  %s776_s5 = inlined_call_operand.hbm [shape: bf16[128,128], index: 5, kind: input, shape index: {}]   ;;  %s777_s6 = inlined_call_operand.vmem [shape: f32[1,128], index: 6, kind: input, shape index: {}]   ;;  %s778_s7 = inlined_call_operand.vmem [shape: f32[8,128], index: 7, kind: output, shape index: {}]  }
   0x1   :  { %13 = vsyncpa [#allocation5], 0  ;;  %s627_s24 = smov [#allocation4]   ;;  %s628_s26 = smov [#allocation2]  }
   0x2   :  { %s35_s25 = sshll.u32 %s627_s24, 4  ;;  %s21_s27 = sshll.u32 %s628_s26, 4  ;;  %s36_s25 = int_to_ptr.vmem [resolvable:$true] %s35_s25  ;;  %s674_s27 = int_to_ptr.vmem [resolvable:$true] %s21_s27 }
   0x3   :  { %s557_s30 = scalar_lea.hbm %s774_s3, 1024 }
   0x4   :  { %p558_p0 = scmp.ne.s32.totalorder %s774_s3, %s557_s30  ;;  %p561_p1 = scmp.lt.u32.totalorder %s557_s30, %s774_s3 }
   0x6   :  { %p563_p2 = pnand %p561_p1, %p558_p0 }
   0x8   :  { %566 = shalt.err (!%p563_p2)
}
   0x9   :  { %s567_s12 = scalar_lea.vmem %s36_s25, 1024  ;;  %p572_p4 = scmp.lt.s32.totalorder %s36_s25, %s36_s25 }
   0xa   :  { %p568_p3 = scmp.ne.s32.totalorder %s36_s25, %s567_s12  ;;  %p573_p5 = scmp.lt.s32.totalorder %s567_s12, %s567_s12 }
   0xc   :  { %p574_p6 = por %p573_p5, %p572_p4 }
   0xe   :  { %p575_p7 = pnand %p574_p6, %p568_p3 }
  0x10   :  { %578 = shalt.err (!%p575_p7)
}
  0x11   :  { %s629_s13 = smov 64   ;;  %s630_s14 = smov 4  }
  0x12   :  { %41 = dma.hbm_to_vmem [thread:$0]  %s774_s3, 1024, %s36_s25, [#allocation5], %s629_s13, %s629_s13, %s630_s14  }
  0x13   :  { %s579_s19 = scalar_lea.hbm %s772_s1, 1024 }
  0x14   :  { %p580_p8 = scmp.ne.s32.totalorder %s772_s1, %s579_s19  ;;  %p583_p9 = scmp.lt.u32.totalorder %s579_s19, %s772_s1 }
  0x16   :  { %p585_p10 = pnand %p583_p9, %p580_p8 }
  0x18   :  { %588 = shalt.err (!%p585_p10)
}
  0x19   :  { %s589_s24 = scalar_lea.vmem %s674_s27, 1024  ;;  %p594_p12 = scmp.lt.s32.totalorder %s674_s27, %s674_s27 }
  0x1a   :  { %p590_p11 = scmp.ne.s32.totalorder %s674_s27, %s589_s24  ;;  %p595_p13 = scmp.lt.s32.totalorder %s589_s24, %s589_s24 }
  0x1c   :  { %p596_p0 = por %p595_p13, %p594_p12 }
  0x1e   :  { %p597_p1 = pnand %p596_p0, %p590_p11 }
  0x20   :  { %600 = shalt.err (!%p597_p1)
}
  0x21   :  { %27 = dma.hbm_to_vmem [thread:$0]  %s772_s1, 1024, %s674_s27, [#allocation3], %s629_s13, %s629_s13, %s630_s14  }
  0x22   :  { %s631_s26 = smov [#allocation6]   ;;  %s601_s8 = scalar_lea.hbm %s776_s5, 1024 }
  0x23   :  { %s49_s28 = sshll.u32 %s631_s26, 4  ;;  %p602_p2 = scmp.ne.s32.totalorder %s776_s5, %s601_s8  ;;  %s50_s28 = int_to_ptr.vmem [resolvable:$true] %s49_s28 }
  0x24   :  { %p605_p3 = scmp.lt.u32.totalorder %s601_s8, %s776_s5 }
  0x26   :  { %p607_p4 = pnand %p605_p3, %p602_p2 }
  0x28   :  { %610 = shalt.err (!%p607_p4)
}
  0x29   :  { %s611_s15 = scalar_lea.vmem %s50_s28, 1024  ;;  %p616_p6 = scmp.lt.s32.totalorder %s50_s28, %s50_s28 }
  0x2a   :  { %p612_p5 = scmp.ne.s32.totalorder %s50_s28, %s611_s15  ;;  %p617_p7 = scmp.lt.s32.totalorder %s611_s15, %s611_s15 }
  0x2c   :  { %p618_p8 = por %p617_p7, %p616_p6 }
  0x2e   :  { %p619_p9 = pnand %p618_p8, %p612_p5 }
  0x30   :  { %622 = shalt.err (!%p619_p9)
}
  0x31   :  { %55 = dma.hbm_to_vmem [thread:$0]  %s776_s5, 1024, %s50_s28, [#allocation5], %s629_s13, %s629_s13, %s630_s14  }
  0x32   :  { %623 = dma.done.wait [#allocation3], 1024  }
  0x33   :  { %624 = vsyncadd [#allocation3], 4294966272 }
  0x34   :  { %625 = dma.done.wait [#allocation5], 2048  }
  0x35   :  { %626 = vsyncadd [#allocation5], 4294965248  ;;  %v632_v0 = vmov 0.0   ;;  %vm633_vm0 = vmmov 0   ;;  %v533_v1 = vld [vmem:[#allocation2] sm:$0xff]   ;;  %v534_v2 = vld [vmem:[#allocation2 + $0x8] sm:$0xff]  }
  0x36   :  { %466 = vmatprep.subr.bf16.mxu0 %v632_v0  ;;  %482 = vmatprep.mubr.msk.bf16.mxu0 %vm633_vm0, %v632_v0  ;;  %v535_v3 = vld [vmem:[#allocation2 + $0x10] sm:$0xff]   ;;  %v541_v4 = vld [vmem:[#allocation4] sm:$0xff]   ;;  %v536_v5 = vld [vmem:[#allocation2 + $0x18] sm:$0xff]  }
  0x37   :  { %486 = vmatprep.subr.bf16.mxu1 %v632_v0  ;;  %502 = vmatprep.mubr.msk.bf16.mxu1 %vm633_vm0, %v632_v0  ;;  %v542_v6 = vld [vmem:[#allocation4 + $0x8] sm:$0xff]   ;;  %v537_v7 = vld [vmem:[#allocation2 + $0x20] sm:$0xff]   ;;  %v543_v8 = vld [vmem:[#allocation4 + $0x10] sm:$0xff]  }
  0x38   :  { %467 = vmatpush3.bf16.msra.mxu0 %v533_v1  ;;  %487 = vmatpush3.bf16.msra.mxu1 %v541_v4  ;;  %v538_v9 = vld [vmem:[#allocation2 + $0x28] sm:$0xff]   ;;  %v544_v10 = vld [vmem:[#allocation4 + $0x18] sm:$0xff]   ;;  %v539_v11 = vld [vmem:[#allocation2 + $0x30] sm:$0xff]  }
  0x39   :  { %468 = vmatprep.subr.bf16.mxu0 %v632_v0  ;;  %488 = vmatprep.subr.bf16.mxu1 %v632_v0  ;;  %v545_v12 = vld [vmem:[#allocation4 + $0x20] sm:$0xff]   ;;  %v540_v13 = vld [vmem:[#allocation2 + $0x38] sm:$0xff]   ;;  %v546_v15 = vld [vmem:[#allocation4 + $0x28] sm:$0xff]  }
  0x3a   :  { %v68_v14 = vld [vmem:[%s771_s0] sm:$0xff]  ;;  %v547_v17 = vld [vmem:[#allocation4 + $0x30] sm:$0xff]   ;;  %v548_v18 = vld [vmem:[#allocation4 + $0x38] sm:$0xff]  }
  0x3b   :  { %v69_v16 = vpack.c.bf16 %v68_v14, %v68_v14  ;;  %v549_v19 = vld [vmem:[#allocation6] sm:$0xff]   ;;  %v550_v20 = vld [vmem:[#allocation6 + $0x8] sm:$0xff]   ;;  %v551_v21 = vld [vmem:[#allocation6 + $0x10] sm:$0xff]  }
  0x3c   :  { %469 = vmatpush3.bf16.msra.mxu0 %v534_v2  ;;  %489 = vmatpush3.bf16.msra.mxu1 %v542_v6  ;;  %v552_v22 = vld [vmem:[#allocation6 + $0x18] sm:$0xff]   ;;  %v553_v23 = vld [vmem:[#allocation6 + $0x20] sm:$0xff]   ;;  %v554_v24 = vld [vmem:[#allocation6 + $0x28] sm:$0xff]  }
  0x3d   :  { %470 = vmatprep.subr.bf16.mxu0 %v632_v0  ;;  %490 = vmatprep.subr.bf16.mxu1 %v632_v0  ;;  %v555_v25 = vld [vmem:[#allocation6 + $0x30] sm:$0xff]   ;;  %v412_v26 = vld [vmem:[%s773_s2] ss:$0 sm:$0xff]  ;;  %v556_v33 = vld [vmem:[#allocation6 + $0x38] sm:$0xff]  }
  0x3e   :  { %v421_v34 = vld [vmem:[%s775_s4] ss:$0 sm:$0xff] }
  0x3f   :  { %v430_v41 = vld [vmem:[%s777_s6] ss:$0 sm:$0xff] }
  0x40   :  { %471 = vmatpush3.bf16.msra.mxu0 %v535_v3  ;;  %491 = vmatpush3.bf16.msra.mxu1 %v543_v8 }
  0x41   :  { %472 = vmatprep.subr.bf16.mxu0 %v632_v0  ;;  %492 = vmatprep.subr.bf16.mxu1 %v632_v0 }
  0x44   :  { %473 = vmatpush3.bf16.msra.mxu0 %v536_v5  ;;  %493 = vmatpush3.bf16.msra.mxu1 %v544_v10 }
  0x45   :  { %474 = vmatprep.subr.bf16.mxu0 %v632_v0  ;;  %494 = vmatprep.subr.bf16.mxu1 %v632_v0 }
  0x48   :  { %475 = vmatpush3.bf16.msra.mxu0 %v537_v7  ;;  %495 = vmatpush3.bf16.msra.mxu1 %v545_v12 }
  0x49   :  { %476 = vmatprep.subr.bf16.mxu0 %v632_v0  ;;  %496 = vmatprep.subr.bf16.mxu1 %v632_v0 }
  0x4c   :  { %477 = vmatpush3.bf16.msra.mxu0 %v538_v9  ;;  %497 = vmatpush3.bf16.msra.mxu1 %v546_v15 }
  0x4d   :  { %478 = vmatprep.subr.bf16.mxu0 %v632_v0  ;;  %498 = vmatprep.subr.bf16.mxu1 %v632_v0 }
  0x50   :  { %479 = vmatpush3.bf16.msra.mxu0 %v539_v11  ;;  %499 = vmatpush3.bf16.msra.mxu1 %v547_v17 }
  0x51   :  { %480 = vmatprep.subr.bf16.mxu0 %v632_v0  ;;  %500 = vmatprep.subr.bf16.mxu1 %v632_v0 }
  0x54   :  { %481 = vmatpush3.bf16.msra.mxu0 %v540_v13  ;;  %501 = vmatpush3.bf16.msra.mxu1 %v548_v18 }
  0x55   :  { %506 = vmatprep.subr.bf16.mxu0 %v632_v0 }
  0x57   :  { %483 = vmatmul.mubr.bf16.vlgmr.msra.gmra.mrb[0].mxu0 %v69_v16 }
  0x58   :  { %522 = vmatprep.mubr.msk.bf16.mxu0 %vm633_vm0, %v632_v0  ;;  %507 = vmatpush3.bf16.msra.mxu0 %v549_v19 }
  0x59   :  { %508 = vmatprep.subr.bf16.mxu0 %v632_v0 }
  0x5c   :  { %509 = vmatpush3.bf16.msra.mxu0 %v550_v20 }
  0x5d   :  { %510 = vmatprep.subr.bf16.mxu0 %v632_v0 }
  0x60   :  { %511 = vmatpush3.bf16.msra.mxu0 %v551_v21 }
  0x61   :  { %512 = vmatprep.subr.bf16.mxu0 %v632_v0 }
  0x64   :  { %513 = vmatpush3.bf16.msra.mxu0 %v552_v22 }
  0x65   :  { %514 = vmatprep.subr.bf16.mxu0 %v632_v0 }
  0x68   :  { %515 = vmatpush3.bf16.msra.mxu0 %v553_v23 }
  0x69   :  { %516 = vmatprep.subr.bf16.mxu0 %v632_v0 }
  0x6c   :  { %517 = vmatpush3.bf16.msra.mxu0 %v554_v24 }
  0x6d   :  { %518 = vmatprep.subr.bf16.mxu0 %v632_v0 }
  0x70   :  { %519 = vmatpush3.bf16.msra.mxu0 %v555_v25 }
  0x71   :  { %520 = vmatprep.subr.bf16.mxu0 %v632_v0 }
  0x74   :  { %521 = vmatpush3.bf16.msra.mxu0 %v556_v33 }
 0x12a   :  { %v175_v27 = vpop.f32.mrb[0].mxu0 }
 0x12b   :  { %v176_v28 = vadd.f32 %v412_v26, %v175_v27  ;;  %v484_v29 = vpop.f32.mrb[1].mxu0 }
 0x12c   :  { %v178_v30 = vpop.f32.mrb[2].mxu0 }
 0x12d   :  { %v181_v31 = vpack.c.bf16 %v176_v28, %v176_v28  ;;  %v485_v32 = vpop.f32.mrb[3].mxu0 }
 0x12f   :  { %503 = vmatmul.mubr.bf16.vlgmr.msra.gmra.mrb[0].mxu1 %v181_v31 }
 0x202   :  { %v287_v35 = vpop.f32.mrb[0].mxu1 }
 0x203   :  { %v288_v36 = vadd.f32 %v421_v34, %v287_v35  ;;  %v504_v37 = vpop.f32.mrb[1].mxu1 }
 0x204   :  { %v290_v38 = vpop.f32.mrb[2].mxu1 }
 0x205   :  { %v293_v39 = vpack.c.bf16 %v288_v36, %v288_v36  ;;  %v505_v40 = vpop.f32.mrb[3].mxu1 }
 0x207   :  { %523 = vmatmul.mubr.bf16.vlgmr.msra.gmra.mrb[4].mxu0 %v293_v39 }
 0x2da   :  { %v399_v42 = vpop.f32.mrb[4].mxu0 }
 0x2db   :  { %v400_v43 = vadd.f32 %v430_v41, %v399_v42  ;;  %v524_v44 = vpop.f32.mrb[5].mxu0 }
 0x2dc   :  { %v402_v45 = vpop.f32.mrb[6].mxu0 }
 0x2dd   :  { %405 = vst [vmem:[%s778_s7] sm:$0xff] %v400_v43  ;;  %v525_v46 = vpop.f32.mrb[7].mxu0 }
 0x2de   :  { %410 = vsyncpa [#allocation3], 1 }
 0x2df   :  { %411 = vsyncpa [#allocation5], 1 }

</bundles_post_ra>
